<compile_context>
chip_gen: v5e
topology: v5e:2x2
jax: 0.10.0
libtpu: 0.0.40
codegen_flags: <defaults>
</compile_context>

<pallas_src>
import math

import jax
import jax.numpy as jnp
from jax.experimental import pallas as pl
from jax.experimental.pallas import tpu as pltpu

_LANES = 128  # lane-dense last dim: full, unmasked vector stores.
_TARGET_BLOCK_BYTES = 2 * 1024 * 1024  # ~2 MiB per block (>=85% HBM roofline)


def _echo_kernel(x_ref, o_ref):
    # Pure identity on the current block.
    o_ref[...] = x_ref[...]


def _echo_2d(x2d: jax.Array) -> jax.Array:
    """Identity copy of a 2D lane-dense slab through a Pallas kernel."""
    rows, lanes = x2d.shape
    dsize = jnp.dtype(x2d.dtype).itemsize

    # Sublane granule per vreg for this dtype (8 for 32-bit, 16 for 16-bit,
    # 32 for 8-bit) -- keeps partial-tiled blocks on full-vreg boundaries.
    sublane = 8 * max(1, 4 // dsize)

    # Biggest row-block that (a) is a multiple of the sublane granule and
    # (b) keeps the block <= ~2 MiB so double-buffered in+out stays well
    # under every generation's default scoped-VMEM limit.
    target_rows = max(sublane,
                      (_TARGET_BLOCK_BYTES // (lanes * dsize)) // sublane * sublane)
    block_rows = min(rows, target_rows)
    if block_rows < rows:
        # Partial tiling of the sublane dim must be a multiple of the granule.
        block_rows = max(sublane, block_rows - (block_rows % sublane))
    grid = (pl.cdiv(rows, block_rows),)

    return pl.pallas_call(
        _echo_kernel,
        out_shape=jax.ShapeDtypeStruct(x2d.shape, x2d.dtype),
        grid_spec=pltpu.PrefetchScalarGridSpec(
            num_scalar_prefetch=0,
            grid=grid,
            in_specs=[pl.BlockSpec((block_rows, lanes), lambda i: (i, 0))],
            out_specs=pl.BlockSpec((block_rows, lanes), lambda i: (i, 0)),
        ),
        # Identity: output aliases the input buffer (no fresh HBM allocation).
        input_output_aliases={0: 0},
        compiler_params=pltpu.CompilerParams(
            dimension_semantics=("parallel",),  # lets v7x shard across 2 TCs
        ),
    )(x2d)


def echo(x: jax.Array) -> jax.Array:
    """Identity forward pass of Echo, run through a Pallas TPU copy kernel."""
    orig_shape = x.shape
    n = math.prod(orig_shape) if orig_shape else 1

    if n % _LANES == 0 and n > 0:
        # Lane-dense 2D layout: last dim = 128 (unmasked full-lane stores).
        x2d = x.reshape(n // _LANES, _LANES)
    else:
        # Fallback: single full-extent block; last-two-dims-equal-full-array
        # waives the (8,128) divisibility constraint.
        x2d = x.reshape(1, n)

    y2d = _echo_2d(x2d)
    return y2d.reshape(orig_shape)


if __name__ == "__main__":
    key = jax.random.PRNGKey(0)
    # Small NCHW input consistent with a generic image-shaped tensor.
    x = jax.random.normal(key, (2, 4, 16, 16), dtype=jnp.float32)

    # Keep an independent reference copy; `x` itself is donated below so the
    # aliased pass-through is free of an extra defensive copy.
    x_ref = x + 0.0
    jax.block_until_ready(x_ref)

    echo_jit = jax.jit(echo, donate_argnums=(0,))
    y = echo_jit(x)
    jax.block_until_ready(y)

    assert y.shape == x_ref.shape and y.dtype == x_ref.dtype
    assert bool(jnp.all(y == x_ref))

    print("KERNEL_OK")
</pallas_src>

<mosaic_0001>
module attributes {stable_mosaic.version = 11 : i64} {
  func.func @_echo_kernel(%arg0: i32, %arg1: memref<16x128xf32, #tpu.memory_space<vmem>>, %arg2: memref<16x128xf32, #tpu.memory_space<vmem>>) attributes {dimension_semantics = [#tpu.dimension_semantics<parallel>], iteration_bounds = array<i64: 1>, scalar_prefetch = 0 : i64, scratch_operands = 0 : i64, tpu.core_type = #tpu.core_type<tc>, window_params = [{transform_indices = @transform_0, window_bounds = array<i64: 16, 128>}, {transform_indices = @transform_1, window_bounds = array<i64: 16, 128>}]} {
    %c0 = arith.constant 0 : index
    %c0_0 = arith.constant 0 : index
    %0 = vector.load %arg1[%c0, %c0_0] : memref<16x128xf32, #tpu.memory_space<vmem>>, vector<16x128xf32>
    %c0_1 = arith.constant 0 : index
    %c0_2 = arith.constant 0 : index
    %1 = vector.load %arg2[%c0_1, %c0_2] : memref<16x128xf32, #tpu.memory_space<vmem>>, vector<16x128xf32>
    tpu.vector_store %arg2[%c0_1, %c0_2], %0 {strides = array<i32>} : memref<16x128xf32, #tpu.memory_space<vmem>>, vector<16x128xf32>,
    return
  }
  func.func @transform_0(%arg0: i32) -> (i32, i32) {
    %c0_i32 = arith.constant 0 : i32
    %c0_i32_0 = arith.constant 0 : i32
    return %arg0, %c0_i32 : i32, i32
  }
  func.func @transform_1(%arg0: i32) -> (i32, i32) {
    %c0_i32 = arith.constant 0 : i32
    %c0_i32_0 = arith.constant 0 : i32
    return %arg0, %c0_i32 : i32, i32
  }
}

</mosaic_0001>

<bundles_post_ra>
// kernel: echo.1
= control target key start
LH: loop header
LB: loop body
LE: loop exit
PB: predicated region body
PF: predicated region fallthrough
CT: control target
= control target key end

     0   :  { %s38_s0 = inlined_call_operand.vmem [shape: f32[16,128], index: 0, kind: input, shape index: {}, may-alias: {0,1}]   ;;  %s39_s1 = inlined_call_operand.vmem [shape: f32[16,128], index: 1, kind: output, shape index: {}, may-alias: {0,1}]  }
   0x1   :  { %v8_v0 = vld [vmem:[%s38_s0] sm:$0xff]  ;;  %v9_v1 = vld [vmem:[%s38_s0 + $0x8] sm:$0xff] }
   0x2   :  { %10 = vst [vmem:[%s39_s1] sm:$0xff] %v8_v0 }
   0x3   :  { %11 = vst [vmem:[%s39_s1 + $0x8] sm:$0xff] %v9_v1 }

</bundles_post_ra>
